<compile_context>
chip_gen: v7x
topology: tpu7x:2x2x1
jax: 0.10.0
libtpu: 0.0.40
codegen_flags: <defaults>
</compile_context>

<pallas_src>
import jax
import jax.numpy as jnp
from jax.experimental import pallas as pl
from jax.experimental.pallas import tpu as pltpu

_HIDDEN = 128  # hard-coded hidden width of the PyTorch module


def _round_up(n, m):
    return ((n + m - 1) // m) * m


def _sigmoid(x):
    # 1 / (1 + exp(-x)); denominator >= 1, so the approx EUP reciprocal is safe.
    return pl.reciprocal(1.0 + jnp.exp(-x), approx=True)


def autoencoder_kernel(
    x_ref,
    w1_ref, b1_ref,   # encoder Linear(input_dim -> 128)
    w2_ref, b2_ref,   # encoder Linear(128 -> latent_dim)
    w3_ref, b3_ref,   # decoder Linear(latent_dim -> 128)
    w4_ref, b4_ref,   # decoder Linear(128 -> input_dim)
    latent_ref, recon_ref,
):
    # x streams in as f32 (no wrapper cast pass over HBM); cast to bf16 for MXU.
    x = x_ref[...].astype(jnp.bfloat16)

    # ---- encoder ----
    h1 = jnp.dot(x, w1_ref[...], preferred_element_type=jnp.float32) + b1_ref[...]
    h1 = jnp.maximum(h1, 0.0)                        # ReLU (f32)
    # BatchNorm -> Identity (use_batch_norm=False) and Dropout(0.0) are no-ops.
    z = jnp.dot(h1.astype(jnp.bfloat16), w2_ref[...],
                preferred_element_type=jnp.float32) + b2_ref[...]
    latent = _sigmoid(jnp.maximum(z, 0.0))           # ReLU -> Sigmoid (f32)
    latent_ref[...] = latent.astype(latent_ref.dtype)

    # ---- decoder ----
    h2 = jnp.dot(latent.astype(jnp.bfloat16), w3_ref[...],
                 preferred_element_type=jnp.float32) + b3_ref[...]
    h2 = jnp.maximum(h2, 0.0)                        # ReLU (f32)
    rec = jnp.dot(h2.astype(jnp.bfloat16), w4_ref[...],
                  preferred_element_type=jnp.float32) + b4_ref[...]
    recon_ref[...] = _sigmoid(rec).astype(recon_ref.dtype)


def _vmem_capacity_bytes():
    """Per-TensorCore VMEM capacity (generation-aware), with a safe fallback."""
    try:
        cap = int(pltpu.get_tpu_info().vmem_capacity_bytes)
        if cap > 0:
            return cap
    except Exception:
        pass
    return 64 << 20  # conservative fallback = v7x; v5e/v6e have 128 MiB


def _resident_spec(shape):
    """Constant-index (VMEM-resident) BlockSpec; single-buffered when supported."""
    idx = lambda i: (0, 0)
    if hasattr(pl, "Buffered"):
        try:
            return pl.BlockSpec(shape, idx, pipeline_mode=pl.Buffered(1))
        except TypeError:
            pass
    return pl.BlockSpec(shape, idx)


def _pick_batch_tile(batch, in_dim, lat_dim, resident_bytes, budget, out_bytes):
    """Largest batch tile (multiple of 8, <= 2048) whose VMEM footprint fits.

    Footprint = double-buffered streamed tiles (x f32 in, latent/recon out)
    + resident weights/biases (counted at 2 buffers to stay conservative even
    when pl.Buffered(1) is unavailable).
    """
    gran = 8
    b_round = _round_up(batch, gran)
    tb = min(2048, b_round)
    # v7x megacore: ensure the batch axis has >= 2 grid blocks whenever there
    # is enough batch to split, so the "parallel" axis actually shards.
    if b_round >= 2 * gran:
        tb = min(tb, _round_up((b_round + 1) // 2, gran))

    def vmem_bytes(t):
        tiles = 2 * (t * in_dim * 4                 # x tile (f32), double-buffered
                     + t * lat_dim * out_bytes      # latent tile
                     + t * in_dim * out_bytes)      # recon tile
        return tiles + resident_bytes

    while tb > gran and vmem_bytes(tb) > budget:
        tb = max(gran, _round_up(tb // 2, gran))
    return tb


def autoencoder_forward(x, params, out_dtype=jnp.float32):
    """x: [B, input_dim] float32. params: dict of f32 weights/biases.

    Returns (latent [B, latent_dim], reconstructed [B, input_dim]) in out_dtype.
    out_dtype=jnp.bfloat16 halves output HBM traffic (the dominant term) if the
    downstream consumer tolerates it; default f32 matches the PyTorch module.
    """
    B, input_dim = x.shape
    latent_dim = params["w2"].shape[1]
    H = _HIDDEN

    # Weights are tiny relative to the streamed batch; a one-time wrapper cast
    # to bf16 is negligible. x itself is passed f32 and cast inside the kernel.
    mm = jnp.bfloat16
    w1 = params["w1"].astype(mm); b1 = params["b1"].astype(jnp.float32)
    w2 = params["w2"].astype(mm); b2 = params["b2"].astype(jnp.float32)
    w3 = params["w3"].astype(mm); b3 = params["b3"].astype(jnp.float32)
    w4 = params["w4"].astype(mm); b4 = params["b4"].astype(jnp.float32)

    out_bytes = jnp.dtype(out_dtype).itemsize
    w_elems = input_dim * H + H * latent_dim + latent_dim * H + H * input_dim
    b_elems = H + latent_dim + H + input_dim
    resident_bytes = 2 * (w_elems * 2) + 2 * (b_elems * 4)   # 2 buffers, conservative

    cap = _vmem_capacity_bytes()
    vmem_limit = int(cap * 0.75)   # ~96 MiB on v5e/v6e, ~48 MiB on v7x
    budget = int(cap * 0.5)        # tile-selection budget (headroom for temps/scratch)
    # For very large input_dim (bf16 w1/w4 approaching `budget`), the right fix
    # is to tile input_dim on an extra "arbitrary" grid axis (K-tiles for the
    # first matmul with an f32 acc scratch, N-tiles for the last) instead of
    # keeping w1/w4 fully resident. Not needed at this module's feature sizes;
    # the budget loop will shrink tb first.

    tb = _pick_batch_tile(B, input_dim, latent_dim, resident_bytes, budget, out_bytes)
    b_pad = _round_up(B, tb)
    n_blocks = b_pad // tb

    x_in = x if b_pad == B else jnp.pad(x, ((0, b_pad - B), (0, 0)))

    # Feature dims keep their true width (full-array-dim blocks): no wrapper
    # column padding, no post-kernel column slice. For small dims the masked
    # partial stores are cheaper than writing 4-8x padded f32 columns.
    in_specs = [
        pl.BlockSpec((tb, input_dim), lambda i: (i, 0)),                    # x tile
        _resident_spec((input_dim, H)), _resident_spec((1, H)),             # w1, b1
        _resident_spec((H, latent_dim)), _resident_spec((1, latent_dim)),   # w2, b2
        _resident_spec((latent_dim, H)), _resident_spec((1, H)),            # w3, b3
        _resident_spec((H, input_dim)), _resident_spec((1, input_dim)),     # w4, b4
    ]
    out_specs = (
        pl.BlockSpec((tb, latent_dim), lambda i: (i, 0)),   # latent tile
        pl.BlockSpec((tb, input_dim), lambda i: (i, 0)),    # recon tile
    )
    out_shapes = (
        jax.ShapeDtypeStruct((b_pad, latent_dim), out_dtype),
        jax.ShapeDtypeStruct((b_pad, input_dim), out_dtype),
    )

    flops = 2 * b_pad * w_elems
    transcendentals = b_pad * (latent_dim + input_dim)      # exp per sigmoid output
    bytes_accessed = (
        b_pad * input_dim * 4                               # x in (f32)
        + b_pad * (latent_dim + input_dim) * out_bytes      # latent + recon out
        + w_elems * 2 + b_elems * 4                         # bf16 weights + f32 biases
    )

    latent_p, recon_p = pl.pallas_call(
        autoencoder_kernel,
        out_shape=out_shapes,
        grid=(n_blocks,),
        in_specs=in_specs,
        out_specs=out_specs,
        compiler_params=pltpu.CompilerParams(
            dimension_semantics=("parallel",),
            vmem_limit_bytes=vmem_limit,
        ),
        cost_estimate=pl.CostEstimate(
            flops=flops,
            transcendentals=transcendentals,
            bytes_accessed=bytes_accessed,
        ),
    )(x_in, w1, b1, w2, b2, w3, b3, w4, b4)

    if b_pad == B:
        return latent_p, recon_p
    return latent_p[:B], recon_p[:B]


def init_params(key, input_dim, latent_dim, hidden=_HIDDEN):
    """Deterministic init mimicking PyTorch nn.Linear default U(-1/sqrt(fan_in), +)."""
    def linear(k, fan_in, fan_out):
        kw, kb = jax.random.split(k)
        bound = 1.0 / jnp.sqrt(fan_in)
        w = jax.random.uniform(kw, (fan_in, fan_out), jnp.float32, -bound, bound)
        b = jax.random.uniform(kb, (1, fan_out), jnp.float32, -bound, bound)
        return w, b

    k1, k2, k3, k4 = jax.random.split(key, 4)
    w1, b1 = linear(k1, input_dim, hidden)     # encoder fc1
    w2, b2 = linear(k2, hidden, latent_dim)    # encoder fc2
    w3, b3 = linear(k3, latent_dim, hidden)    # decoder fc1
    w4, b4 = linear(k4, hidden, input_dim)     # decoder fc2
    return dict(w1=w1, b1=b1, w2=w2, b2=b2, w3=w3, b3=b3, w4=w4, b4=b4)


def reference_forward(x, p):
    """Pure-JAX f32 reference for correctness check."""
    h1 = jnp.maximum(x @ p["w1"] + p["b1"], 0.0)
    latent = jax.nn.sigmoid(jnp.maximum(h1 @ p["w2"] + p["b2"], 0.0))
    h2 = jnp.maximum(latent @ p["w3"] + p["b3"], 0.0)
    recon = jax.nn.sigmoid(h2 @ p["w4"] + p["b4"])
    return latent, recon


if __name__ == "__main__":
    key = jax.random.PRNGKey(0)
    kx, kp = jax.random.split(key)

    batch = 32        # exercises a 2-block batch grid (megacore-friendly)
    input_dim = 32
    latent_dim = 16

    x = jax.random.normal(kx, (batch, input_dim), dtype=jnp.float32)
    params = init_params(kp, input_dim, latent_dim)

    latent, recon = autoencoder_forward(x, params)
    jax.block_until_ready((latent, recon))

    lat_ref, rec_ref = reference_forward(x, params)
    assert latent.shape == (batch, latent_dim)
    assert recon.shape == (batch, input_dim)
    # bf16 matmul inputs (f32 accumulation / epilogue) + approx EUP reciprocal
    # => relaxed tolerance vs the pure-f32 reference; sigmoid outputs are in
    # [0, 1] so absolute error stays small.
    assert jnp.allclose(latent, lat_ref, atol=2e-2, rtol=2e-2), (
        float(jnp.max(jnp.abs(latent - lat_ref))))
    assert jnp.allclose(recon, rec_ref, atol=2e-2, rtol=2e-2), (
        float(jnp.max(jnp.abs(recon - rec_ref))))

    print("KERNEL_OK")
</pallas_src>

<mosaic_0001>
module attributes {stable_mosaic.version = 11 : i64} {
  func.func @autoencoder_kernel(%arg0: i32, %arg1: memref<16x32xf32, #tpu.memory_space<vmem>>, %arg2: memref<32x128xbf16, #tpu.memory_space<vmem>>, %arg3: memref<1x128xf32, #tpu.memory_space<vmem>>, %arg4: memref<128x16xbf16, #tpu.memory_space<vmem>>, %arg5: memref<1x16xf32, #tpu.memory_space<vmem>>, %arg6: memref<16x128xbf16, #tpu.memory_space<vmem>>, %arg7: memref<1x128xf32, #tpu.memory_space<vmem>>, %arg8: memref<128x32xbf16, #tpu.memory_space<vmem>>, %arg9: memref<1x32xf32, #tpu.memory_space<vmem>>, %arg10: memref<16x16xf32, #tpu.memory_space<vmem>>, %arg11: memref<16x32xf32, #tpu.memory_space<vmem>>) attributes {dimension_semantics = [#tpu.dimension_semantics<parallel>], iteration_bounds = array<i64: 2>, scalar_prefetch = 0 : i64, scratch_operands = 0 : i64, tpu.core_type = #tpu.core_type<tc>, window_params = [{transform_indices = @transform_0, window_bounds = array<i64: 16, 32>}, {pipeline_mode = #tpu.pipeline_mode<synchronous>, transform_indices = @transform_1, window_bounds = array<i64: 32, 128>}, {pipeline_mode = #tpu.pipeline_mode<synchronous>, transform_indices = @transform_2, window_bounds = array<i64: 1, 128>}, {pipeline_mode = #tpu.pipeline_mode<synchronous>, transform_indices = @transform_3, window_bounds = array<i64: 128, 16>}, {pipeline_mode = #tpu.pipeline_mode<synchronous>, transform_indices = @transform_4, window_bounds = array<i64: 1, 16>}, {pipeline_mode = #tpu.pipeline_mode<synchronous>, transform_indices = @transform_5, window_bounds = array<i64: 16, 128>}, {pipeline_mode = #tpu.pipeline_mode<synchronous>, transform_indices = @transform_6, window_bounds = array<i64: 1, 128>}, {pipeline_mode = #tpu.pipeline_mode<synchronous>, transform_indices = @transform_7, window_bounds = array<i64: 128, 32>}, {pipeline_mode = #tpu.pipeline_mode<synchronous>, transform_indices = @transform_8, window_bounds = array<i64: 1, 32>}, {transform_indices = @transform_9, window_bounds = array<i64: 16, 16>}, {transform_indices = @transform_10, window_bounds = array<i64: 16, 32>}]} {
    %c0 = arith.constant 0 : index
    %c0_0 = arith.constant 0 : index
    %0 = vector.load %arg1[%c0, %c0_0] : memref<16x32xf32, #tpu.memory_space<vmem>>, vector<16x32xf32>
    %1 = arith.truncf %0 : vector<16x32xf32> to vector<16x32xbf16>
    %c0_1 = arith.constant 0 : index
    %c0_2 = arith.constant 0 : index
    %2 = vector.load %arg2[%c0_1, %c0_2] : memref<32x128xbf16, #tpu.memory_space<vmem>>, vector<32x128xbf16>
    %cst = arith.constant dense<0.000000e+00> : vector<16x128xf32>
    %3 = tpu.matmul %1, %2, %cst {dimension_numbers = #tpu.dot_dimension_numbers<[1], [0], [0], [1], [0, 0, 1, 1], [], []>} : vector<16x32xbf16>, vector<32x128xbf16>, vector<16x128xf32> -> vector<16x128xf32>
    %c0_3 = arith.constant 0 : index
    %c0_4 = arith.constant 0 : index
    %4 = vector.load %arg3[%c0_3, %c0_4] : memref<1x128xf32, #tpu.memory_space<vmem>>, vector<1x128xf32>
    %5 = vector.broadcast %4 : vector<1x128xf32> to vector<16x128xf32>
    %6 = arith.addf %3, %5 : vector<16x128xf32>
    %cst_5 = arith.constant 0.000000e+00 : f32
    %7 = vector.broadcast %cst_5 : f32 to vector<16x128xf32>
    %8 = arith.maximumf %6, %7 : vector<16x128xf32>
    %9 = arith.truncf %8 : vector<16x128xf32> to vector<16x128xbf16>
    %c0_6 = arith.constant 0 : index
    %c0_7 = arith.constant 0 : index
    %10 = vector.load %arg4[%c0_6, %c0_7] : memref<128x16xbf16, #tpu.memory_space<vmem>>, vector<128x16xbf16>
    %cst_8 = arith.constant dense<0.000000e+00> : vector<16x16xf32>
    %11 = tpu.matmul %9, %10, %cst_8 {dimension_numbers = #tpu.dot_dimension_numbers<[1], [0], [0], [1], [0, 0, 1, 1], [], []>} : vector<16x128xbf16>, vector<128x16xbf16>, vector<16x16xf32> -> vector<16x16xf32>
    %c0_9 = arith.constant 0 : index
    %c0_10 = arith.constant 0 : index
    %12 = vector.load %arg5[%c0_9, %c0_10] : memref<1x16xf32, #tpu.memory_space<vmem>>, vector<1x16xf32>
    %13 = vector.broadcast %12 : vector<1x16xf32> to vector<16x16xf32>
    %14 = arith.addf %11, %13 : vector<16x16xf32>
    %cst_11 = arith.constant 0.000000e+00 : f32
    %15 = vector.broadcast %cst_11 : f32 to vector<16x16xf32>
    %16 = arith.maximumf %14, %15 : vector<16x16xf32>
    %cst_12 = arith.constant 0.000000e+00 : f32
    %17 = vector.broadcast %cst_12 : f32 to vector<16x16xf32>
    %18 = arith.subf %17, %16 : vector<16x16xf32>
    %19 = math.exp %18 : vector<16x16xf32>
    %cst_13 = arith.constant 1.000000e+00 : f32
    %20 = vector.broadcast %cst_13 : f32 to vector<16x16xf32>
    %21 = arith.addf %20, %19 : vector<16x16xf32>
    %22 = tpu.reciprocal %21 {approx = true} : vector<16x16xf32> -> vector<16x16xf32>
    %c0_14 = arith.constant 0 : index
    %c0_15 = arith.constant 0 : index
    %23 = vector.load %arg10[%c0_14, %c0_15] : memref<16x16xf32, #tpu.memory_space<vmem>>, vector<16x16xf32>
    tpu.vector_store %arg10[%c0_14, %c0_15], %22 {strides = array<i32>} : memref<16x16xf32, #tpu.memory_space<vmem>>, vector<16x16xf32>,
    %24 = arith.truncf %22 : vector<16x16xf32> to vector<16x16xbf16>
    %c0_16 = arith.constant 0 : index
    %c0_17 = arith.constant 0 : index
    %25 = vector.load %arg6[%c0_16, %c0_17] : memref<16x128xbf16, #tpu.memory_space<vmem>>, vector<16x128xbf16>
    %cst_18 = arith.constant dense<0.000000e+00> : vector<16x128xf32>
    %26 = tpu.matmul %24, %25, %cst_18 {dimension_numbers = #tpu.dot_dimension_numbers<[1], [0], [0], [1], [0, 0, 1, 1], [], []>} : vector<16x16xbf16>, vector<16x128xbf16>, vector<16x128xf32> -> vector<16x128xf32>
    %c0_19 = arith.constant 0 : index
    %c0_20 = arith.constant 0 : index
    %27 = vector.load %arg7[%c0_19, %c0_20] : memref<1x128xf32, #tpu.memory_space<vmem>>, vector<1x128xf32>
    %28 = vector.broadcast %27 : vector<1x128xf32> to vector<16x128xf32>
    %29 = arith.addf %26, %28 : vector<16x128xf32>
    %cst_21 = arith.constant 0.000000e+00 : f32
    %30 = vector.broadcast %cst_21 : f32 to vector<16x128xf32>
    %31 = arith.maximumf %29, %30 : vector<16x128xf32>
    %32 = arith.truncf %31 : vector<16x128xf32> to vector<16x128xbf16>
    %c0_22 = arith.constant 0 : index
    %c0_23 = arith.constant 0 : index
    %33 = vector.load %arg8[%c0_22, %c0_23] : memref<128x32xbf16, #tpu.memory_space<vmem>>, vector<128x32xbf16>
    %cst_24 = arith.constant dense<0.000000e+00> : vector<16x32xf32>
    %34 = tpu.matmul %32, %33, %cst_24 {dimension_numbers = #tpu.dot_dimension_numbers<[1], [0], [0], [1], [0, 0, 1, 1], [], []>} : vector<16x128xbf16>, vector<128x32xbf16>, vector<16x32xf32> -> vector<16x32xf32>
    %c0_25 = arith.constant 0 : index
    %c0_26 = arith.constant 0 : index
    %35 = vector.load %arg9[%c0_25, %c0_26] : memref<1x32xf32, #tpu.memory_space<vmem>>, vector<1x32xf32>
    %36 = vector.broadcast %35 : vector<1x32xf32> to vector<16x32xf32>
    %37 = arith.addf %34, %36 : vector<16x32xf32>
    %cst_27 = arith.constant 0.000000e+00 : f32
    %38 = vector.broadcast %cst_27 : f32 to vector<16x32xf32>
    %39 = arith.subf %38, %37 : vector<16x32xf32>
    %40 = math.exp %39 : vector<16x32xf32>
    %cst_28 = arith.constant 1.000000e+00 : f32
    %41 = vector.broadcast %cst_28 : f32 to vector<16x32xf32>
    %42 = arith.addf %41, %40 : vector<16x32xf32>
    %43 = tpu.reciprocal %42 {approx = true} : vector<16x32xf32> -> vector<16x32xf32>
    %c0_29 = arith.constant 0 : index
    %c0_30 = arith.constant 0 : index
    %44 = vector.load %arg11[%c0_29, %c0_30] : memref<16x32xf32, #tpu.memory_space<vmem>>, vector<16x32xf32>
    tpu.vector_store %arg11[%c0_29, %c0_30], %43 {strides = array<i32>} : memref<16x32xf32, #tpu.memory_space<vmem>>, vector<16x32xf32>,
    return
  }
  func.func @transform_0(%arg0: i32) -> (i32, i32) {
    %c0_i32 = arith.constant 0 : i32
    %c0_i32_0 = arith.constant 0 : i32
    return %arg0, %c0_i32 : i32, i32
  }
  func.func @transform_1(%arg0: i32) -> (i32, i32) {
    %c0_i32 = arith.constant 0 : i32
    %c0_i32_0 = arith.constant 0 : i32
    %c0_i32_1 = arith.constant 0 : i32
    return %c0_i32, %c0_i32_0 : i32, i32
  }
  func.func @transform_2(%arg0: i32) -> (i32, i32) {
    %c0_i32 = arith.constant 0 : i32
    %c0_i32_0 = arith.constant 0 : i32
    %c0_i32_1 = arith.constant 0 : i32
    return %c0_i32, %c0_i32_0 : i32, i32
  }
  func.func @transform_3(%arg0: i32) -> (i32, i32) {
    %c0_i32 = arith.constant 0 : i32
    %c0_i32_0 = arith.constant 0 : i32
    %c0_i32_1 = arith.constant 0 : i32
    return %c0_i32, %c0_i32_0 : i32, i32
  }
  func.func @transform_4(%arg0: i32) -> (i32, i32) {
    %c0_i32 = arith.constant 0 : i32
    %c0_i32_0 = arith.constant 0 : i32
    %c0_i32_1 = arith.constant 0 : i32
    return %c0_i32, %c0_i32_0 : i32, i32
  }
  func.func @transform_5(%arg0: i32) -> (i32, i32) {
    %c0_i32 = arith.constant 0 : i32
    %c0_i32_0 = arith.constant 0 : i32
    %c0_i32_1 = arith.constant 0 : i32
    return %c0_i32, %c0_i32_0 : i32, i32
  }
  func.func @transform_6(%arg0: i32) -> (i32, i32) {
    %c0_i32 = arith.constant 0 : i32
    %c0_i32_0 = arith.constant 0 : i32
    %c0_i32_1 = arith.constant 0 : i32
    return %c0_i32, %c0_i32_0 : i32, i32
  }
  func.func @transform_7(%arg0: i32) -> (i32, i32) {
    %c0_i32 = arith.constant 0 : i32
    %c0_i32_0 = arith.constant 0 : i32
    %c0_i32_1 = arith.constant 0 : i32
    return %c0_i32, %c0_i32_0 : i32, i32
  }
  func.func @transform_8(%arg0: i32) -> (i32, i32) {
    %c0_i32 = arith.constant 0 : i32
    %c0_i32_0 = arith.constant 0 : i32
    %c0_i32_1 = arith.constant 0 : i32
    return %c0_i32, %c0_i32_0 : i32, i32
  }
  func.func @transform_9(%arg0: i32) -> (i32, i32) {
    %c0_i32 = arith.constant 0 : i32
    %c0_i32_0 = arith.constant 0 : i32
    return %arg0, %c0_i32 : i32, i32
  }
  func.func @transform_10(%arg0: i32) -> (i32, i32) {
    %c0_i32 = arith.constant 0 : i32
    %c0_i32_0 = arith.constant 0 : i32
    return %arg0, %c0_i32 : i32, i32
  }
}

</mosaic_0001>

<bundles_post_ra>
// kernel: tpu_custom_call.1
= control target key start
LH: loop header
LB: loop body
LE: loop exit
PB: predicated region body
PF: predicated region fallthrough
CT: control target
= control target key end

     0   :  { %16 = vsyncpa [#allocation3], 0  ;;  %s1404_s0 = inlined_call_operand.vmem [shape: f32[32,32], index: 0, kind: input, shape index: {}]   ;;  %s1405_s1 = inlined_call_operand.vmem [shape: bf16[32,128], index: 1, kind: input, shape index: {}]   ;;  %s1406_s2 = inlined_call_operand.vmem [shape: f32[1,128], index: 2, kind: input, shape index: {}]   ;;  %s1407_s3 = inlined_call_operand.vmem [shape: bf16[128,16], index: 3, kind: input, shape index: {}]   ;;  %s1408_s4 = inlined_call_operand.vmem [shape: f32[1,16], index: 4, kind: input, shape index: {}]   ;;  %s1409_s5 = inlined_call_operand.vmem [shape: bf16[16,128], index: 5, kind: input, shape index: {}]   ;;  %s1410_s6 = inlined_call_operand.vmem [shape: f32[1,128], index: 6, kind: input, shape index: {}]   ;;  %s1411_s7 = inlined_call_operand.vmem [shape: bf16[128,32], index: 7, kind: input, shape index: {}]   ;;  %s1412_s8 = inlined_call_operand.vmem [shape: f32[1,32], index: 8, kind: input, shape index: {}]   ;;  %s1413_s9 = inlined_call_operand.vmem [shape: f32[32,16], index: 9, kind: output, shape index: {0}]   ;;  %s1414_s10 = inlined_call_operand.hbm [shape: f32[32,32], index: 10, kind: output, shape index: {1}]  }
   0x1   :  { %18 = vsyncpa [#allocation3 + $0x1], 0  ;;  %s1193_s13 = smov 0   ;;  %s1195_s14 = smov 0  }
   0x2   :  { %s1197_s15 = smov 0   ;;  %s1199_s16 = smov 0  }
   0x3 LB: > { %s1214_s17 = sadd.s32 4294967295, %s1131_s16   ;;  %s874_s18 = sadd.s32 4294967294, %s1131_s16   ;;  %s1131_s16 = sphi %s1199_s16, %s1420_s16   ;;  %s1127_s15 = sphi %s1197_s15, %s1419_s15   ;;  %s1123_s14 = sphi %s1195_s14, %s1418_s14   ;;  %s1119_s13 = sphi %s1193_s13, %s1417_s13  }
   0x4   : > { %s1218_s19 = sadd.s32 1, %s1131_s16   ;;  %s251_s20 = sadd.s32 1, %s1127_s15 }
   0x5   : > { %s248_s21 = ssub.s32 %s1131_s16, %s1218_s19  ;;  %p261_p0 = scmp.ne.s32.totalorder %s1127_s15, %s1123_s14 }
   0x6   : > { %p249_p1 = scmp.eq.s32.totalorder %s248_s21, 0  ;;  %p262_p2 = scmp.eq.s32.totalorder %s1214_s17, 1 }
   0x7   : > { %p267_p3 = scmp.ne.s32.totalorder %s1123_s14, %s1119_s13  ;;  %p268_p4 = scmp.eq.s32.totalorder %s874_s18, 1 }
   0x8   : > { %s1229_s22 = scalar_select %p249_p1, %s1127_s15, %s251_s20  }
   0x9   : > { %p1231_p5 = por %p262_p2, %p261_p0  ;;  %p1235_p6 = por %p268_p4, %p267_p3 }
   0xa   : > { %p877_p7 = scmp.ge.s32.totalorder %s1131_s16, 1  ;;  %p319_p8 = scmp.lt.s32.totalorder %s1131_s16, 3 }
   0xc   : > { %p320_p9 = pnand %p877_p7, %p319_p8 }
   0xd   : > { %v1034_v0 = vld [vmem:[%s1405_s1] sm:$0xff] (!%p320_p9)   ;;  %v1133_v1 = vmov (!%p320_p9), 0.0   ;;  %v1035_v2 = vld [vmem:[%s1405_s1 + $0x8] sm:$0xff] (!%p320_p9)   ;;  %vm1134_vm0 = vmmov (!%p320_p9), 0   ;;  %s879_s29 = sshll.u32 (!%p320_p9), %s1214_s17, 1  ;;  %vm402_vm1 = vcmask (!%p320_p9), 261120  }
   0xe   : > { %323 = sbr.rel (%p320_p9) target bundleno = 974 (0x3ce), region = 56  ;;  %937 = vmatprep.subr.bf16.mxu1 (!%p320_p9), %v1133_v1  ;;  %965 = vmatprep.subr.bf16.mxu0 (!%p320_p9), %v1133_v1  ;;  %p363_p10 = scmp.lt.s32.totalorder (!%p320_p9), %s879_s29, 3  ;;  %v1036_v3 = vld [vmem:[%s1407_s3] sm:$0xff] (!%p320_p9)   ;;  %v1037_v7 = vld [vmem:[%s1407_s3 + $0x8] sm:$0xff] (!%p320_p9)   ;;  %v1038_v8 = vld [vmem:[%s1407_s3 + $0x10] sm:$0xff] (!%p320_p9)   ;;  %vm574_vm2 = vcmask (!%p320_p9), 130048  }
   0xf   : > { %938 = vmatpush3.bf16.msra.mxu1 (!%p320_p9), %v1034_v0  ;;  %941 = vmatprep.mubr.msk.bf16.mxu1 (!%p320_p9), %vm1134_vm0, %v1133_v1  ;;  %v1039_v9 = vld [vmem:[%s1407_s3 + $0x18] sm:$0xff] (!%p320_p9)   ;;  %v1040_v10 = vld [vmem:[%s1407_s3 + $0x20] sm:$0xff] (!%p320_p9)   ;;  %v1041_v11 = vld [vmem:[%s1407_s3 + $0x28] sm:$0xff] (!%p320_p9)   ;;  %s359_s28 = sand.u32 (!%p320_p9), 1, %s1123_s14   ;;  %s913_s12 = sshll.u32 (!%p320_p9), %s1214_s17, 8 }
  0x10   : > { %939 = vmatprep.subr.bf16.mxu1 (!%p320_p9), %v1133_v1  ;;  %967 = vmatprep.mubr.msk.bf16.mxu0 (!%p320_p9), %vm1134_vm0, %v1133_v1  ;;  %v1042_v12 = vld [vmem:[%s1407_s3 + $0x30] sm:$0xff] (!%p320_p9)   ;;  %v1043_v13 = vld [vmem:[%s1407_s3 + $0x38] sm:$0xff] (!%p320_p9)   ;;  %v883_v14 = vld [vmem:[%s1406_s2] ss:$0 sm:$0xff] (!%p320_p9)  ;;  %s1363_s25 = scalar_lea.sflag (!%p320_p9), [#allocation3], %s359_s28  ;;  %s1135_s26 = smov (!%p320_p9), [#allocation2]  }
  0x11   : > { %v1044_v24 = vld [vmem:[%s1409_s5] sm:$0xff] (!%p320_p9)   ;;  %v1046_v46 = vld [vmem:[%s1411_s7 + $0x8] sm:$0xff] (!%p320_p9)   ;;  %v1047_v47 = vld [vmem:[%s1411_s7 + $0x10] sm:$0xff] (!%p320_p9)   ;;  %s1073_s27 = sshll.u32 (!%p320_p9), %s1135_s26, 4  ;;  %s1074_s27 = int_to_ptr.vmem [resolvable:$false] %s1073_s27 }
  0x12   : > { %966 = vmatpush3.bf16.msra.mxu0 (!%p320_p9), %v1044_v24  ;;  %v887_v25 = vld [vmem:[%s1408_s4] ss:$0 sm:$0xff] (!%p320_p9)  ;;  %v1048_v48 = vld [vmem:[%s1411_s7 + $0x18] sm:$0xff] (!%p320_p9)   ;;  %v1050_v50 = vld [vmem:[%s1411_s7 + $0x28] sm:$0xff] (!%p320_p9)  }
  0x13   : > { %940 = vmatpush3.bf16.msra.mxu1 (!%p320_p9), %v1035_v2  ;;  %971 = vmatprep.subr.bf16.mxu0 (!%p320_p9), %v1133_v1  ;;  %v1045_v44 = vld [vmem:[%s1411_s7] sm:$0xff] (!%p320_p9)   ;;  %v1051_v51 = vld [vmem:[%s1411_s7 + $0x30] sm:$0xff] (!%p320_p9)   ;;  %v1052_v52 = vld [vmem:[%s1411_s7 + $0x38] sm:$0xff] (!%p320_p9)  }
  0x14   : > { %945 = vmatprep.subr.bf16.mxu1 (!%p320_p9), %v1133_v1  ;;  %v1049_v49 = vld [vmem:[%s1411_s7 + $0x20] sm:$0xff] (!%p320_p9)  }
  0x15   : > { %s1422_s29 = smov (!%p363_p10, %s879_s29), 3  ;;  %v896_v53 = vld [vmem:[%s1410_s6] ss:$0 sm:$0xff] }
  0x16   : > { %s880_s30 = sshll.u32 %s1422_s29, 3  ;;  %v899_v63 = vld [vmem:[%s1412_s8] ss:$0 sm:$0xff] }
  0x17   : > { %s366_s18 = scalar_lea.vmem %s1404_s0, %s880_s30  ;;  %s372_s11 = scalar_lea.vmem %s1413_s9, %s880_s30 }
  0x18   : > { %v376_v4 = vld [vmem:[%s366_s18] sm:$0xff]  ;;  %v377_v5 = vld [vmem:[%s366_s18 + $0x8] sm:$0xff]  ;;  %s1357_s30 = scalar_lea.hbm %s1414_s10, %s913_s12 }
  0x19   : > { %v378_v6 = vpack.c.bf16 %v377_v5, %v376_v4 }
  0x1b   : > { %942 = vmatmul.mubr.msk.bf16.vlgmr.msra.gmra.mrb[0].mxu1 %vm402_vm1, %v378_v6 }
  0x1c   : > { %946 = vmatpush3.bf16.msra.mxu1 %v1036_v3  ;;  %961 = vmatprep.mubr.msk.bf16.mxu1 %vm1134_vm0, %v1133_v1 }
  0x1d   : > { %947 = vmatprep.subr.bf16.mxu1 %v1133_v1 }
  0x20   : > { %948 = vmatpush3.bf16.msra.mxu1 %v1037_v7 }
  0x21   : > { %949 = vmatprep.subr.bf16.mxu1 %v1133_v1 }
  0x24   : > { %950 = vmatpush3.bf16.msra.mxu1 %v1038_v8 }
  0x25   : > { %951 = vmatprep.subr.bf16.mxu1 %v1133_v1 }
  0x28   : > { %952 = vmatpush3.bf16.msra.mxu1 %v1039_v9 }
  0x29   : > { %953 = vmatprep.subr.bf16.mxu1 %v1133_v1 }
  0x2c   : > { %954 = vmatpush3.bf16.msra.mxu1 %v1040_v10 }
  0x2d   : > { %955 = vmatprep.subr.bf16.mxu1 %v1133_v1 }
  0x30   : > { %956 = vmatpush3.bf16.msra.mxu1 %v1041_v11 }
  0x31   : > { %957 = vmatprep.subr.bf16.mxu1 %v1133_v1 }
  0x34   : > { %958 = vmatpush3.bf16.msra.mxu1 %v1042_v12 }
  0x35   : > { %959 = vmatprep.subr.bf16.mxu1 %v1133_v1 }
  0x38   : > { %960 = vmatpush3.bf16.msra.mxu1 %v1043_v13 }
  0xee   : > { %v440_v15 = vpop.f32.mrb[0].mxu1 }
  0xef   : > { %v441_v16 = vadd.f32 %v883_v14, %v440_v15  ;;  %v943_v17 = vpop.f32.mrb[1].mxu1 }
  0xf0   : > { %v443_v18 = vpop.f32.mrb[2].mxu1 }
  0xf1   : > { %v444_v19 = vadd.f32 %v883_v14, %v443_v18  ;;  %v944_v20 = vpop.f32.mrb[3].mxu1  ;;  %v447_v21 = vmax.f32 %v441_v16, 0.0 }
  0xf3   : > { %v448_v22 = vmax.f32 %v444_v19, 0.0 }
  0xf5   : > { %v449_v23 = vpack.c.bf16 %v448_v22, %v447_v21 }
  0xf7   : > { %962 = vmatmul.mubr.bf16.vlgmr.msra.gmra.mrb[4].mxu1 %v449_v23 }
 0x1ca   : > { %v555_v26 = vpop.f32.mrb[4].mxu1 }
 0x1cb   : > { %v556_v27 = vadd.f32 %v887_v25, %v555_v26  ;;  %v963_v28 = vpop.f32.mrb[5].mxu1 }
 0x1cc   : > { %v558_v29 = vpop.f32.mrb[6].mxu1 }
 0x1cd   : > { %v562_v30 = vmax.f32 %v556_v27, 0.0  ;;  %v559_v31 = vadd.f32 %v887_v25, %v558_v29  ;;  %v964_v32 = vpop.f32.mrb[7].mxu1 }
 0x1cf   : > { %v564_v33 = vsub.f32 0.0, %v562_v30  ;;  %v563_v34 = vmax.f32 %v559_v31, 0.0 }
 0x1d1   : > { %v566_v35 = vmul.f32 1.442695, %v564_v33  ;;  %v565_v36 = vsub.f32 0.0, %v563_v34 }
 0x1d3   : > { %1053 = vpow2.f32 %v566_v35  ;;  %v568_v37 = vmul.f32 1.442695, %v565_v36 }
 0x1d5   : > { %1055 = vpow2.f32 %v568_v37 }
 0x1dd   : > { %v1054_v38 = vpop.eup %1053 }
 0x1de   : > { %v570_v39 = vadd.f32 1.0, %v1054_v38 }
 0x1df   : > { %v1056_v40 = vpop.eup %1055 }
 0x1e0   : > { %1057 = vrcp.f32 %v570_v39  ;;  %v571_v41 = vadd.f32 1.0, %v1056_v40 }
 0x1e2   : > { %1059 = vrcp.f32 %v571_v41 }
 0x1ea   : > { %v1058_v42 = vpop.eup %1057 }
 0x1eb   : > { %575 = vst.msk [vmem:[%s372_s11] sm:$0xff] %vm574_vm2, %v1058_v42 }
 0x1ec   : > { %v1060_v43 = vpop.eup %1059 }
 0x1ed   : > { %576 = vst.msk [vmem:[%s372_s11 + $0x8] sm:$0xff] %vm574_vm2, %v1060_v43  ;;  %v577_v45 = vpack.c.bf16 %v1060_v43, %v1058_v42  ;;  %s878_s11 = sshll.u32 %s359_s28, 4 }
 0x1ee   : > { %s361_s18 = scalar_lea.vmem [#allocation2], %s878_s11  ;;  %s1075_s11 = scalar_lea.vmem %s1074_s27, 512 }
 0x1ef   : > { %968 = vmatmul.mubr.msk.bf16.vlgmr.msra.gmra.mrb[0].mxu0 %vm574_vm2, %v577_v45  ;;  %s787_s20 = sshll.u32 %s361_s18, 4  ;;  %s1359_s20 = int_to_ptr.vmem [resolvable:$true] %s787_s20 }
 0x1f0   : > { %972 = vmatpush3.bf16.msra.mxu0 %v1045_v44  ;;  %987 = vmatprep.mubr.msk.bf16.mxu0 %vm1134_vm0, %v1133_v1  ;;  %s1069_s17 = scalar_lea.vmem %s1359_s20, 256  ;;  %p1076_p0 = scmp.lt.s32.totalorder %s1359_s20, %s1074_s27 }
 0x1f1   : > { %973 = vmatprep.subr.bf16.mxu0 %v1133_v1  ;;  %p1070_p11 = scmp.ne.s32.totalorder %s1359_s20, %s1069_s17  ;;  %p1077_p1 = scmp.lt.s32.totalorder %s1075_s11, %s1069_s17 }
 0x1f3   : > { %p1071_p12 = pnand %p1070_p11, %p1231_p5  ;;  %p1078_p2 = por %p1077_p1, %p1076_p0 }
 0x1f4   : > { %974 = vmatpush3.bf16.msra.mxu0 %v1046_v46 }
 0x1f5   : > { %975 = vmatprep.subr.bf16.mxu0 %v1133_v1  ;;  %p1072_p13 = pneg %p1071_p12 }
 0x1f7   : > { %p1079_p3 = pnand %p1078_p2, %p1072_p13 }
 0x1f8   : > { %976 = vmatpush3.bf16.msra.mxu0 %v1047_v47 }
 0x1f9   : > { %977 = vmatprep.subr.bf16.mxu0 %v1133_v1 }
 0x1fc   : > { %978 = vmatpush3.bf16.msra.mxu0 %v1048_v48 }
 0x1fd   : > { %979 = vmatprep.subr.bf16.mxu0 %v1133_v1 }
 0x200   : > { %980 = vmatpush3.bf16.msra.mxu0 %v1049_v49 }
 0x201   : > { %981 = vmatprep.subr.bf16.mxu0 %v1133_v1 }
 0x204   : > { %982 = vmatpush3.bf16.msra.mxu0 %v1050_v50 }
 0x205   : > { %983 = vmatprep.subr.bf16.mxu0 %v1133_v1 }
 0x208   : > { %984 = vmatpush3.bf16.msra.mxu0 %v1051_v51 }
 0x209   : > { %985 = vmatprep.subr.bf16.mxu0 %v1133_v1 }
 0x20c   : > { %986 = vmatpush3.bf16.msra.mxu0 %v1052_v52 }
 0x2c2   : > { %v630_v54 = vpop.f32.mrb[0].mxu0 }
 0x2c3   : > { %v631_v55 = vadd.f32 %v896_v53, %v630_v54  ;;  %v969_v56 = vpop.f32.mrb[1].mxu0 }
 0x2c4   : > { %v633_v57 = vpop.f32.mrb[2].mxu0 }
 0x2c5   : > { %v634_v58 = vadd.f32 %v896_v53, %v633_v57  ;;  %v970_v59 = vpop.f32.mrb[3].mxu0  ;;  %v637_v60 = vmax.f32 %v631_v55, 0.0 }
 0x2c7   : > { %v638_v61 = vmax.f32 %v634_v58, 0.0 }
 0x2c9   : > { %v639_v62 = vpack.c.bf16 %v638_v61, %v637_v60 }
 0x2cb   : > { %988 = vmatmul.mubr.bf16.vlgmr.msra.gmra.mrb[4].mxu0 %v639_v62 }
 0x39e   : > { %v745_v0 = vpop.f32.mrb[4].mxu0 }
 0x39f   : > { %v746_v1 = vadd.f32 %v899_v63, %v745_v0  ;;  %v989_v2 = vpop.f32.mrb[5].mxu0 }
 0x3a0   : > { %v748_v3 = vpop.f32.mrb[6].mxu0 }
 0x3a1   : > { %v752_v4 = vsub.f32 0.0, %v746_v1  ;;  %v749_v5 = vadd.f32 %v899_v63, %v748_v3  ;;  %v990_v6 = vpop.f32.mrb[7].mxu0 }
 0x3a3   : > { %v754_v7 = vmul.f32 1.442695, %v752_v4  ;;  %v753_v8 = vsub.f32 0.0, %v749_v5 }
 0x3a5   : > { %1061 = vpow2.f32 %v754_v7  ;;  %v756_v9 = vmul.f32 1.442695, %v753_v8 }
 0x3a7   : > { %1063 = vpow2.f32 %v756_v9 }
 0x3af   : > { %v1062_v10 = vpop.eup %1061 }
 0x3b0   : > { %v758_v11 = vadd.f32 1.0, %v1062_v10 }
 0x3b1   : > { %v1064_v12 = vpop.eup %1063 }
 0x3b2   : > { %1065 = vrcp.f32 %v758_v11  ;;  %v759_v13 = vadd.f32 1.0, %v1064_v12 }
 0x3b4   : > { %1067 = vrcp.f32 %v759_v13 }
 0x3bc   : > { %v1066_v14 = vpop.eup %1065 }
 0x3bd   : > { %762 = vst.msk [vmem:[%s361_s18] sm:$0xff] %vm402_vm1, %v1066_v14 }
 0x3be   : > { %v1068_v15 = vpop.eup %1067 }
 0x3bf   : > { %763 = vst.msk [vmem:[%s361_s18 + $0x8] sm:$0xff] %vm402_vm1, %v1068_v15 }
 0x3c0   : > { %1082 = shalt.err (!%p1079_p3)
}
 0x3c1   : > { %s1083_s28 = scalar_lea.hbm %s1357_s30, 256  ;;  %s1087_s21 = scalar_lea.hbm %s1414_s10, 512 }
 0x3c2   : > { %p1084_p4 = scmp.ne.s32.totalorder %s1357_s30, %s1083_s28  ;;  %p1088_p9 = scmp.lt.u32.totalorder %s1357_s30, %s1414_s10 }
 0x3c3   : > { %p1089_p10 = scmp.lt.u32.totalorder %s1087_s21, %s1083_s28  ;;  %p1091_p12 = scmp.lt.u32.totalorder %s1083_s28, %s1357_s30 }
 0x3c4   : > { %p1085_p7 = pnand %p1084_p4, %p1231_p5 }
 0x3c5   : > { %p1090_p11 = por %p1089_p10, %p1088_p9 }
 0x3c6   : > { %p1086_p8 = pneg %p1085_p7 }
 0x3c7   : > { %p1092_p13 = por %p1091_p12, %p1090_p11 }
 0x3c9   : > { %p1093_p0 = pnand %p1092_p13, %p1086_p8 }
 0x3cb   : > { %1096 = shalt.err (!%p1093_p0)
}
 0x3cc   : > { %s1136_s17 = smov 128   ;;  %s1137_s27 = smov 8  }
 0x3cd   : > { %991 = dma.vmem_to_hbm [thread:$0]  (%p1231_p5), %s1359_s20, 256, %s1357_s30, %s1363_s25, %s1136_s17, %s1136_s17, %s1137_s27  }
 0x3ce PF: > { %p997_p1 = scmp.ge.s32.totalorder %s1131_s16, 2  ;;  %s810_s11 = sand.u32 1, %s1119_s13  }
 0x3cf   : > { %s811_s28 = scalar_lea.sflag [#allocation3], %s810_s11 }
 0x3d0   : > { %p994_p2 = pnand %p997_p1, %p1235_p6 }
 0x3d2   : > { %1114 = dma.done.wait (!%p994_p2), %s811_s28, 256  }
 0x3d3   : > { %1116 = vsyncadd (!%p994_p2), %s811_s28, 4294967040  ;;  %p21_p3 = scmp.ge.s32.totalorder %s1218_s19, 4   ;;  %s1417_s13 = smov %s1123_s14 }
 0x3d4   : > { %s1418_s14 = smov %s1127_s15  ;;  %s1419_s15 = smov %s1229_s22 }
 0x3d5   : > { %s1420_s16 = smov %s1218_s19  ;;  %23 = sbr.rel (!%p21_p3) target bundleno = 3 (0x3), region = 103 }
 0x3dc   :  { %816 = vsyncpa [#allocation3], 1 }
 0x3dd   :  { %818 = vsyncpa [#allocation3 + $0x1], 1 }

</bundles_post_ra>
